<compile_context>
chip_gen: v7x
topology: tpu7x:2x2x1
jax: 0.10.0
libtpu: 0.0.40
codegen_flags: <defaults>
</compile_context>

<pallas_src>
import functools

import jax
import jax.numpy as jnp
from jax import lax
from jax.experimental import pallas as pl
from jax.experimental.pallas import tpu as pltpu


def _spatial_tap_table(wsp, H, W):
    """(18, H*W) table: conv tap weight x zero-padding validity mask.

    Row c*9 + (dy+1)*3 + (dx+1) holds weight w[0, c, dy+1, dx+1] at the output
    positions whose sampled input (y+dy, x+dx) lies inside the image, and 0
    outside -- this realizes the padding=1 zero border exactly, including the
    row-wraparound positions the flat lane roll would otherwise pick up.
    """
    HW = H * W
    yy = jnp.arange(H, dtype=jnp.int32)[:, None]
    xx = jnp.arange(W, dtype=jnp.int32)[None, :]
    masks = []
    for dy in (-1, 0, 1):
        for dx in (-1, 0, 1):
            valid = ((yy + dy >= 0) & (yy + dy < H) &
                     (xx + dx >= 0) & (xx + dx < W))
            masks.append(valid.reshape(HW))
    masks = jnp.stack(masks).astype(jnp.float32)          # (9, HW)
    taps = wsp.astype(jnp.float32).reshape(2, 9)          # (channel, ky*3 + kx)
    return (taps[:, :, None] * masks[None, :, :]).reshape(18, HW)


def _pick_batch_tile(B, C, HW):
    """Largest divisor of B that keeps a block ~2 MiB and the grid >= 2 steps."""
    per_batch_bytes = C * HW * 4
    cap = max(1, (2 * 1024 * 1024) // max(per_batch_bytes, 1))  # ~2 MiB x-block
    best = 1
    for tb in range(1, B + 1):
        if B % tb != 0 or tb > cap:
            continue
        if B >= 2 and B // tb < 2:      # keep both v7x TensorCores busy
            continue
        best = max(best, tb)
    return best


def cbam_kernel(x_ref, w1t_ref, b1_ref, w2t_ref, b2_ref, wspm_ref, bsp_ref,
                out_ref, *, W):
    TB, C, HW = x_ref.shape
    xb = x_ref[...].astype(jnp.float32)                   # (TB, C, HW)

    # ---------------- channel attention ----------------
    # Lane-axis reductions (XLU) over the spatial dim.
    avg = jnp.sum(xb, axis=2) * (1.0 / HW)                # (TB, C)
    mx = jnp.max(xb, axis=2)                              # (TB, C)
    pooled = jnp.concatenate([avg, mx], axis=0)           # (2*TB, C): [avg; max]

    # Shared MLP as two small matmuls (weights pre-transposed in the wrapper),
    # one pass covering both the avg and max branches.
    h = jnp.dot(pooled, w1t_ref[...], preferred_element_type=jnp.float32)
    h = jnp.maximum(h + b1_ref[...], 0.0)                 # (2*TB, Cr)
    o = jnp.dot(h, w2t_ref[...], preferred_element_type=jnp.float32)
    o = o + b2_ref[...]                                   # (2*TB, C)
    att = jax.nn.sigmoid(o[:TB] + o[TB:])                 # (TB, C)

    x_ca = xb * att[:, :, None]                           # channel-gated input

    # ---------------- spatial attention ----------------
    avg_map = jnp.sum(x_ca, axis=1) * (1.0 / C)           # (TB, HW)
    max_map = jnp.max(x_ca, axis=1)                       # (TB, HW)

    wm = wspm_ref[...]                                    # (18, HW) weight*mask
    acc = jnp.full((TB, HW), bsp_ref[0], jnp.float32)
    for c, m in enumerate((avg_map, max_map)):            # torch cat order (avg, max)
        for t in range(9):
            dy, dx = t // 3 - 1, t % 3 - 1
            # out[p] <- m[p + dy*W + dx]; wraparound taps are zeroed by wm.
            shift = (-(dy * W + dx)) % HW
            rolled = pltpu.roll(m, shift, axis=1) if shift else m
            acc = acc + rolled * wm[c * 9 + t:c * 9 + t + 1, :]
    sp_att = jax.nn.sigmoid(acc)                          # (TB, HW)

    # Single lane-dense store of the fully gated result.
    out_ref[...] = (x_ca * sp_att[:, None, :]).astype(out_ref.dtype)


def cbam_forward(x, w1, b1, w2, b2, wsp, bsp, *, batch_tile=None):
    B, C, H, W = x.shape
    Cr = w1.shape[0]
    HW = H * W

    x_flat = x.reshape(B, C, HW)
    w1t = jnp.asarray(w1, jnp.float32).T                  # (C, Cr)
    b1r = jnp.asarray(b1, jnp.float32).reshape(1, Cr)
    w2t = jnp.asarray(w2, jnp.float32).T                  # (Cr, C)
    b2r = jnp.asarray(b2, jnp.float32).reshape(1, C)
    wspm = _spatial_tap_table(jnp.asarray(wsp, jnp.float32), H, W)   # (18, HW)
    bspr = jnp.asarray(bsp, jnp.float32).reshape(1)

    tb = batch_tile if batch_tile is not None else _pick_batch_tile(B, C, HW)
    grid = (B // tb,)

    full2d = lambda b: (0, 0)
    flops = int(B * HW * (6 * C + 40) + 8 * B * C * Cr)
    transcendentals = int(2 * B * C + B * HW)
    bytes_accessed = int(4 * (2 * B * C * HW + 2 * C * Cr + 2 * (C + Cr)
                              + 18 * HW + 1))

    out_flat = pl.pallas_call(
        functools.partial(cbam_kernel, W=W),
        out_shape=jax.ShapeDtypeStruct((B, C, HW), x.dtype),
        grid=grid,
        in_specs=[
            pl.BlockSpec((tb, C, HW), lambda b: (b, 0, 0)),     # x batch tile
            pl.BlockSpec((C, Cr), full2d),                      # fc1 weight^T
            pl.BlockSpec((1, Cr), full2d),                      # fc1 bias
            pl.BlockSpec((Cr, C), full2d),                      # fc2 weight^T
            pl.BlockSpec((1, C), full2d),                       # fc2 bias
            pl.BlockSpec((18, HW), full2d),                     # conv tap table
            pl.BlockSpec(memory_space=pltpu.MemorySpace.SMEM),  # conv bias
        ],
        out_specs=pl.BlockSpec((tb, C, HW), lambda b: (b, 0, 0)),
        compiler_params=pltpu.CompilerParams(
            dimension_semantics=("parallel",),
            vmem_limit_bytes=32 * 1024 * 1024),
        cost_estimate=pl.CostEstimate(
            flops=flops, transcendentals=transcendentals,
            bytes_accessed=bytes_accessed),
    )(x_flat, w1t, b1r, w2t, b2r, wspm, bspr)
    return out_flat.reshape(B, C, H, W)


def cbam_reference(x, w1, b1, w2, b2, wsp, bsp):
    HI = jax.lax.Precision.HIGHEST
    avg = jnp.mean(x, axis=(2, 3))                              # (B, C)
    mx = jnp.max(x, axis=(2, 3))                                # (B, C)

    def mlp(v):
        h = jnp.maximum(jnp.dot(v, w1.T, precision=HI) + b1, 0.0)
        return jnp.dot(h, w2.T, precision=HI) + b2

    ch = jax.nn.sigmoid(mlp(avg) + mlp(mx))                     # (B, C)
    xc = x * ch[:, :, None, None]
    avg_m = jnp.mean(xc, axis=1, keepdims=True)
    max_m = jnp.max(xc, axis=1, keepdims=True)
    cat = jnp.concatenate([avg_m, max_m], axis=1)               # (B, 2, H, W)
    wconv = wsp.reshape(1, 2, 3, 3)
    conv = lax.conv_general_dilated(
        cat, wconv, window_strides=(1, 1), padding=((1, 1), (1, 1)),
        dimension_numbers=("NCHW", "OIHW", "NCHW"), precision=HI)
    conv = conv + bsp.reshape(1, 1, 1, 1)
    return xc * jax.nn.sigmoid(conv)


if __name__ == "__main__":
    key = jax.random.PRNGKey(0)
    kx, k1, k2, k3, k4, k5, k6 = jax.random.split(key, 7)
    B, C, H, W = 2, 4, 16, 16
    reduction = 2
    Cr = C // reduction

    x = jax.random.normal(kx, (B, C, H, W), dtype=jnp.float32)
    # fc1: Conv2d(C, C//r, 1) -> weight (Cr, C), bias (Cr,)
    w1 = jax.random.normal(k1, (Cr, C), dtype=jnp.float32) * 0.5
    b1 = jax.random.normal(k2, (Cr,), dtype=jnp.float32) * 0.1
    # fc2: Conv2d(C//r, C, 1) -> weight (C, Cr), bias (C,)
    w2 = jax.random.normal(k3, (C, Cr), dtype=jnp.float32) * 0.5
    b2 = jax.random.normal(k4, (C,), dtype=jnp.float32) * 0.1
    # conv_after_concat: Conv2d(2, 1, 3, padding=1) -> weight (1,2,3,3) flat, bias (1,)
    wsp = jax.random.normal(k5, (18,), dtype=jnp.float32) * 0.2
    bsp = jax.random.normal(k6, (1,), dtype=jnp.float32) * 0.1

    out = jax.block_until_ready(cbam_forward(x, w1, b1, w2, b2, wsp, bsp))
    ref = cbam_reference(x, w1, b1, w2, b2, wsp, bsp)

    err = float(jnp.max(jnp.abs(out - ref)))
    # The spatial conv path (rolls + masks) is exact; the tolerance only needs
    # to absorb possible reduced-precision MXU passes in the tiny MLP matmuls,
    # and is far tighter than any shift/index/gating bug would produce.
    if not (out.shape == ref.shape and err < 3e-2):
        raise AssertionError(f"CBAM kernel mismatch: max abs err = {err}")
    print("KERNEL_OK")
</pallas_src>

<mosaic_0001>
module attributes {stable_mosaic.version = 11 : i64} {
  func.func @cbam_kernel(%arg0: i32, %arg1: memref<1x4x256xf32, #tpu.memory_space<vmem>>, %arg2: memref<4x2xf32, #tpu.memory_space<vmem>>, %arg3: memref<1x2xf32, #tpu.memory_space<vmem>>, %arg4: memref<2x4xf32, #tpu.memory_space<vmem>>, %arg5: memref<1x4xf32, #tpu.memory_space<vmem>>, %arg6: memref<18x256xf32, #tpu.memory_space<vmem>>, %arg7: memref<1xf32, #tpu.memory_space<smem>>, %arg8: memref<1x4x256xf32, #tpu.memory_space<vmem>>) attributes {dimension_semantics = [#tpu.dimension_semantics<parallel>], iteration_bounds = array<i64: 2>, scalar_prefetch = 0 : i64, scratch_operands = 0 : i64, tpu.core_type = #tpu.core_type<tc>, window_params = [{transform_indices = @transform_0, window_bounds = array<i64: 1, 4, 256>}, {pipeline_mode = #tpu.pipeline_mode<synchronous>, transform_indices = @transform_1, window_bounds = array<i64: 4, 2>}, {pipeline_mode = #tpu.pipeline_mode<synchronous>, transform_indices = @transform_2, window_bounds = array<i64: 1, 2>}, {pipeline_mode = #tpu.pipeline_mode<synchronous>, transform_indices = @transform_3, window_bounds = array<i64: 2, 4>}, {pipeline_mode = #tpu.pipeline_mode<synchronous>, transform_indices = @transform_4, window_bounds = array<i64: 1, 4>}, {pipeline_mode = #tpu.pipeline_mode<synchronous>, transform_indices = @transform_5, window_bounds = array<i64: 18, 256>}, {transform_indices = @transform_6, window_bounds = array<i64: 1>}, {transform_indices = @transform_7, window_bounds = array<i64: 1, 4, 256>}]} {
    %c0 = arith.constant 0 : index
    %c0_0 = arith.constant 0 : index
    %c0_1 = arith.constant 0 : index
    %0 = vector.load %arg1[%c0, %c0_0, %c0_1] : memref<1x4x256xf32, #tpu.memory_space<vmem>>, vector<1x4x256xf32>
    %cst = arith.constant dense<0.000000e+00> : vector<1x4xf32>
    %1 = vector.multi_reduction <add>, %0, %cst [2] : vector<1x4x256xf32> to vector<1x4xf32>
    %cst_2 = arith.constant 3.906250e-03 : f32
    %2 = vector.broadcast %cst_2 : f32 to vector<1x4xf32>
    %3 = arith.mulf %1, %2 : vector<1x4xf32>
    %cst_3 = arith.constant dense<0xFF800000> : vector<1x4xf32>
    %4 = vector.multi_reduction <maximumf>, %0, %cst_3 [2] : vector<1x4x256xf32> to vector<1x4xf32>
    %5 = tpu.concatenate %3, %4 in 0 : vector<1x4xf32>, vector<1x4xf32> -> vector<2x4xf32>
    %c0_4 = arith.constant 0 : index
    %c0_5 = arith.constant 0 : index
    %6 = vector.load %arg2[%c0_4, %c0_5] : memref<4x2xf32, #tpu.memory_space<vmem>>, vector<4x2xf32>
    %cst_6 = arith.constant dense<0.000000e+00> : vector<2x2xf32>
    %7 = tpu.matmul %5, %6, %cst_6 {dimension_numbers = #tpu.dot_dimension_numbers<[1], [0], [0], [1], [0, 0, 1, 1], [], []>} : vector<2x4xf32>, vector<4x2xf32>, vector<2x2xf32> -> vector<2x2xf32>
    %c0_7 = arith.constant 0 : index
    %c0_8 = arith.constant 0 : index
    %8 = vector.load %arg3[%c0_7, %c0_8] : memref<1x2xf32, #tpu.memory_space<vmem>>, vector<1x2xf32>
    %9 = vector.broadcast %8 : vector<1x2xf32> to vector<2x2xf32>
    %10 = arith.addf %7, %9 : vector<2x2xf32>
    %cst_9 = arith.constant 0.000000e+00 : f32
    %11 = vector.broadcast %cst_9 : f32 to vector<2x2xf32>
    %12 = arith.maximumf %10, %11 : vector<2x2xf32>
    %c0_10 = arith.constant 0 : index
    %c0_11 = arith.constant 0 : index
    %13 = vector.load %arg4[%c0_10, %c0_11] : memref<2x4xf32, #tpu.memory_space<vmem>>, vector<2x4xf32>
    %cst_12 = arith.constant dense<0.000000e+00> : vector<2x4xf32>
    %14 = tpu.matmul %12, %13, %cst_12 {dimension_numbers = #tpu.dot_dimension_numbers<[1], [0], [0], [1], [0, 0, 1, 1], [], []>} : vector<2x2xf32>, vector<2x4xf32>, vector<2x4xf32> -> vector<2x4xf32>
    %c0_13 = arith.constant 0 : index
    %c0_14 = arith.constant 0 : index
    %15 = vector.load %arg5[%c0_13, %c0_14] : memref<1x4xf32, #tpu.memory_space<vmem>>, vector<1x4xf32>
    %16 = vector.broadcast %15 : vector<1x4xf32> to vector<2x4xf32>
    %17 = arith.addf %14, %16 : vector<2x4xf32>
    %18 = vector.extract_strided_slice %17 {offsets = [0, 0], sizes = [1, 4], strides = [1, 1]} : vector<2x4xf32> to vector<1x4xf32>
    %19 = vector.extract_strided_slice %17 {offsets = [1, 0], sizes = [1, 4], strides = [1, 1]} : vector<2x4xf32> to vector<1x4xf32>
    %20 = arith.addf %18, %19 : vector<1x4xf32>
    %21 = arith.negf %20 : vector<1x4xf32>
    %22 = math.exp %21 : vector<1x4xf32>
    %cst_15 = arith.constant 1.000000e+00 : f32
    %23 = vector.broadcast %cst_15 : f32 to vector<1x4xf32>
    %24 = arith.addf %23, %22 : vector<1x4xf32>
    %25 = arith.divf %23, %24 : vector<1x4xf32>
    %26 = vector.shape_cast %25 : vector<1x4xf32> to vector<1x4x1xf32>
    %27 = vector.broadcast %26 : vector<1x4x1xf32> to vector<1x4x256xf32>
    %28 = arith.mulf %0, %27 : vector<1x4x256xf32>
    %cst_16 = arith.constant dense<0.000000e+00> : vector<1x256xf32>
    %29 = vector.multi_reduction <add>, %28, %cst_16 [1] : vector<1x4x256xf32> to vector<1x256xf32>
    %cst_17 = arith.constant 2.500000e-01 : f32
    %30 = vector.broadcast %cst_17 : f32 to vector<1x256xf32>
    %31 = arith.mulf %29, %30 : vector<1x256xf32>
    %cst_18 = arith.constant dense<0xFF800000> : vector<1x256xf32>
    %32 = vector.multi_reduction <maximumf>, %28, %cst_18 [1] : vector<1x4x256xf32> to vector<1x256xf32>
    %c0_19 = arith.constant 0 : index
    %c0_20 = arith.constant 0 : index
    %33 = vector.load %arg6[%c0_19, %c0_20] : memref<18x256xf32, #tpu.memory_space<vmem>>, vector<18x256xf32>
    %c0_21 = arith.constant 0 : index
    %34 = memref.load %arg7[%c0_21] : memref<1xf32, #tpu.memory_space<smem>>
    %35 = vector.broadcast %34 : f32 to vector<1x256xf32>
    %c17_i32 = arith.constant 17 : i32
    %36 = tpu.dynamic_rotate %31 by %c17_i32 dim 1 : vector<1x256xf32>, i32 -> vector<1x256xf32>
    %37 = vector.extract_strided_slice %33 {offsets = [0, 0], sizes = [1, 256], strides = [1, 1]} : vector<18x256xf32> to vector<1x256xf32>
    %38 = arith.mulf %36, %37 : vector<1x256xf32>
    %39 = arith.addf %35, %38 : vector<1x256xf32>
    %c16_i32 = arith.constant 16 : i32
    %40 = tpu.dynamic_rotate %31 by %c16_i32 dim 1 : vector<1x256xf32>, i32 -> vector<1x256xf32>
    %41 = vector.extract_strided_slice %33 {offsets = [1, 0], sizes = [1, 256], strides = [1, 1]} : vector<18x256xf32> to vector<1x256xf32>
    %42 = arith.mulf %40, %41 : vector<1x256xf32>
    %43 = arith.addf %39, %42 : vector<1x256xf32>
    %c15_i32 = arith.constant 15 : i32
    %44 = tpu.dynamic_rotate %31 by %c15_i32 dim 1 : vector<1x256xf32>, i32 -> vector<1x256xf32>
    %45 = vector.extract_strided_slice %33 {offsets = [2, 0], sizes = [1, 256], strides = [1, 1]} : vector<18x256xf32> to vector<1x256xf32>
    %46 = arith.mulf %44, %45 : vector<1x256xf32>
    %47 = arith.addf %43, %46 : vector<1x256xf32>
    %c1_i32 = arith.constant 1 : i32
    %48 = tpu.dynamic_rotate %31 by %c1_i32 dim 1 : vector<1x256xf32>, i32 -> vector<1x256xf32>
    %49 = vector.extract_strided_slice %33 {offsets = [3, 0], sizes = [1, 256], strides = [1, 1]} : vector<18x256xf32> to vector<1x256xf32>
    %50 = arith.mulf %48, %49 : vector<1x256xf32>
    %51 = arith.addf %47, %50 : vector<1x256xf32>
    %52 = vector.extract_strided_slice %33 {offsets = [4, 0], sizes = [1, 256], strides = [1, 1]} : vector<18x256xf32> to vector<1x256xf32>
    %53 = arith.mulf %31, %52 : vector<1x256xf32>
    %54 = arith.addf %51, %53 : vector<1x256xf32>
    %c255_i32 = arith.constant 255 : i32
    %55 = tpu.dynamic_rotate %31 by %c255_i32 dim 1 : vector<1x256xf32>, i32 -> vector<1x256xf32>
    %56 = vector.extract_strided_slice %33 {offsets = [5, 0], sizes = [1, 256], strides = [1, 1]} : vector<18x256xf32> to vector<1x256xf32>
    %57 = arith.mulf %55, %56 : vector<1x256xf32>
    %58 = arith.addf %54, %57 : vector<1x256xf32>
    %c241_i32 = arith.constant 241 : i32
    %59 = tpu.dynamic_rotate %31 by %c241_i32 dim 1 : vector<1x256xf32>, i32 -> vector<1x256xf32>
    %60 = vector.extract_strided_slice %33 {offsets = [6, 0], sizes = [1, 256], strides = [1, 1]} : vector<18x256xf32> to vector<1x256xf32>
    %61 = arith.mulf %59, %60 : vector<1x256xf32>
    %62 = arith.addf %58, %61 : vector<1x256xf32>
    %c240_i32 = arith.constant 240 : i32
    %63 = tpu.dynamic_rotate %31 by %c240_i32 dim 1 : vector<1x256xf32>, i32 -> vector<1x256xf32>
    %64 = vector.extract_strided_slice %33 {offsets = [7, 0], sizes = [1, 256], strides = [1, 1]} : vector<18x256xf32> to vector<1x256xf32>
    %65 = arith.mulf %63, %64 : vector<1x256xf32>
    %66 = arith.addf %62, %65 : vector<1x256xf32>
    %c239_i32 = arith.constant 239 : i32
    %67 = tpu.dynamic_rotate %31 by %c239_i32 dim 1 : vector<1x256xf32>, i32 -> vector<1x256xf32>
    %68 = vector.extract_strided_slice %33 {offsets = [8, 0], sizes = [1, 256], strides = [1, 1]} : vector<18x256xf32> to vector<1x256xf32>
    %69 = arith.mulf %67, %68 : vector<1x256xf32>
    %70 = arith.addf %66, %69 : vector<1x256xf32>
    %c17_i32_22 = arith.constant 17 : i32
    %71 = tpu.dynamic_rotate %32 by %c17_i32_22 dim 1 : vector<1x256xf32>, i32 -> vector<1x256xf32>
    %72 = vector.extract_strided_slice %33 {offsets = [9, 0], sizes = [1, 256], strides = [1, 1]} : vector<18x256xf32> to vector<1x256xf32>
    %73 = arith.mulf %71, %72 : vector<1x256xf32>
    %74 = arith.addf %70, %73 : vector<1x256xf32>
    %c16_i32_23 = arith.constant 16 : i32
    %75 = tpu.dynamic_rotate %32 by %c16_i32_23 dim 1 : vector<1x256xf32>, i32 -> vector<1x256xf32>
    %76 = vector.extract_strided_slice %33 {offsets = [10, 0], sizes = [1, 256], strides = [1, 1]} : vector<18x256xf32> to vector<1x256xf32>
    %77 = arith.mulf %75, %76 : vector<1x256xf32>
    %78 = arith.addf %74, %77 : vector<1x256xf32>
    %c15_i32_24 = arith.constant 15 : i32
    %79 = tpu.dynamic_rotate %32 by %c15_i32_24 dim 1 : vector<1x256xf32>, i32 -> vector<1x256xf32>
    %80 = vector.extract_strided_slice %33 {offsets = [11, 0], sizes = [1, 256], strides = [1, 1]} : vector<18x256xf32> to vector<1x256xf32>
    %81 = arith.mulf %79, %80 : vector<1x256xf32>
    %82 = arith.addf %78, %81 : vector<1x256xf32>
    %c1_i32_25 = arith.constant 1 : i32
    %83 = tpu.dynamic_rotate %32 by %c1_i32_25 dim 1 : vector<1x256xf32>, i32 -> vector<1x256xf32>
    %84 = vector.extract_strided_slice %33 {offsets = [12, 0], sizes = [1, 256], strides = [1, 1]} : vector<18x256xf32> to vector<1x256xf32>
    %85 = arith.mulf %83, %84 : vector<1x256xf32>
    %86 = arith.addf %82, %85 : vector<1x256xf32>
    %87 = vector.extract_strided_slice %33 {offsets = [13, 0], sizes = [1, 256], strides = [1, 1]} : vector<18x256xf32> to vector<1x256xf32>
    %88 = arith.mulf %32, %87 : vector<1x256xf32>
    %89 = arith.addf %86, %88 : vector<1x256xf32>
    %c255_i32_26 = arith.constant 255 : i32
    %90 = tpu.dynamic_rotate %32 by %c255_i32_26 dim 1 : vector<1x256xf32>, i32 -> vector<1x256xf32>
    %91 = vector.extract_strided_slice %33 {offsets = [14, 0], sizes = [1, 256], strides = [1, 1]} : vector<18x256xf32> to vector<1x256xf32>
    %92 = arith.mulf %90, %91 : vector<1x256xf32>
    %93 = arith.addf %89, %92 : vector<1x256xf32>
    %c241_i32_27 = arith.constant 241 : i32
    %94 = tpu.dynamic_rotate %32 by %c241_i32_27 dim 1 : vector<1x256xf32>, i32 -> vector<1x256xf32>
    %95 = vector.extract_strided_slice %33 {offsets = [15, 0], sizes = [1, 256], strides = [1, 1]} : vector<18x256xf32> to vector<1x256xf32>
    %96 = arith.mulf %94, %95 : vector<1x256xf32>
    %97 = arith.addf %93, %96 : vector<1x256xf32>
    %c240_i32_28 = arith.constant 240 : i32
    %98 = tpu.dynamic_rotate %32 by %c240_i32_28 dim 1 : vector<1x256xf32>, i32 -> vector<1x256xf32>
    %99 = vector.extract_strided_slice %33 {offsets = [16, 0], sizes = [1, 256], strides = [1, 1]} : vector<18x256xf32> to vector<1x256xf32>
    %100 = arith.mulf %98, %99 : vector<1x256xf32>
    %101 = arith.addf %97, %100 : vector<1x256xf32>
    %c239_i32_29 = arith.constant 239 : i32
    %102 = tpu.dynamic_rotate %32 by %c239_i32_29 dim 1 : vector<1x256xf32>, i32 -> vector<1x256xf32>
    %103 = vector.extract_strided_slice %33 {offsets = [17, 0], sizes = [1, 256], strides = [1, 1]} : vector<18x256xf32> to vector<1x256xf32>
    %104 = arith.mulf %102, %103 : vector<1x256xf32>
    %105 = arith.addf %101, %104 : vector<1x256xf32>
    %106 = arith.negf %105 : vector<1x256xf32>
    %107 = math.exp %106 : vector<1x256xf32>
    %cst_30 = arith.constant 1.000000e+00 : f32
    %108 = vector.broadcast %cst_30 : f32 to vector<1x256xf32>
    %109 = arith.addf %108, %107 : vector<1x256xf32>
    %110 = arith.divf %108, %109 : vector<1x256xf32>
    %111 = vector.shape_cast %110 : vector<1x256xf32> to vector<1x1x256xf32>
    %112 = vector.broadcast %111 : vector<1x1x256xf32> to vector<1x4x256xf32>
    %113 = arith.mulf %28, %112 : vector<1x4x256xf32>
    %c0_31 = arith.constant 0 : index
    %c0_32 = arith.constant 0 : index
    %c0_33 = arith.constant 0 : index
    %114 = vector.load %arg8[%c0_31, %c0_32, %c0_33] : memref<1x4x256xf32, #tpu.memory_space<vmem>>, vector<1x4x256xf32>
    tpu.vector_store %arg8[%c0_31, %c0_32, %c0_33], %113 {strides = array<i32>} : memref<1x4x256xf32, #tpu.memory_space<vmem>>, vector<1x4x256xf32>,
    return
  }
  func.func @transform_0(%arg0: i32) -> (i32, i32, i32) {
    %c0_i32 = arith.constant 0 : i32
    %c0_i32_0 = arith.constant 0 : i32
    %c0_i32_1 = arith.constant 0 : i32
    return %arg0, %c0_i32, %c0_i32_0 : i32, i32, i32
  }
  func.func @transform_1(%arg0: i32) -> (i32, i32) {
    %c0_i32 = arith.constant 0 : i32
    %c0_i32_0 = arith.constant 0 : i32
    %c0_i32_1 = arith.constant 0 : i32
    return %c0_i32, %c0_i32_0 : i32, i32
  }
  func.func @transform_2(%arg0: i32) -> (i32, i32) {
    %c0_i32 = arith.constant 0 : i32
    %c0_i32_0 = arith.constant 0 : i32
    %c0_i32_1 = arith.constant 0 : i32
    return %c0_i32, %c0_i32_0 : i32, i32
  }
  func.func @transform_3(%arg0: i32) -> (i32, i32) {
    %c0_i32 = arith.constant 0 : i32
    %c0_i32_0 = arith.constant 0 : i32
    %c0_i32_1 = arith.constant 0 : i32
    return %c0_i32, %c0_i32_0 : i32, i32
  }
  func.func @transform_4(%arg0: i32) -> (i32, i32) {
    %c0_i32 = arith.constant 0 : i32
    %c0_i32_0 = arith.constant 0 : i32
    %c0_i32_1 = arith.constant 0 : i32
    return %c0_i32, %c0_i32_0 : i32, i32
  }
  func.func @transform_5(%arg0: i32) -> (i32, i32) {
    %c0_i32 = arith.constant 0 : i32
    %c0_i32_0 = arith.constant 0 : i32
    %c0_i32_1 = arith.constant 0 : i32
    return %c0_i32, %c0_i32_0 : i32, i32
  }
  func.func @transform_6(%arg0: i32) -> i32 {
    %c0_i32 = arith.constant 0 : i32
    %c0_i32_0 = arith.constant 0 : i32
    return %c0_i32 : i32
  }
  func.func @transform_7(%arg0: i32) -> (i32, i32, i32) {
    %c0_i32 = arith.constant 0 : i32
    %c0_i32_0 = arith.constant 0 : i32
    %c0_i32_1 = arith.constant 0 : i32
    return %arg0, %c0_i32, %c0_i32_0 : i32, i32, i32
  }
}

</mosaic_0001>

<bundles_post_ra>
// kernel: tpu_custom_call.1
= control target key start
LH: loop header
LB: loop body
LE: loop exit
PB: predicated region body
PF: predicated region fallthrough
CT: control target
= control target key end

     0   :  { %s1703_s0 = inlined_call_operand.hbm [shape: f32[2,4,256], index: 0, kind: input, shape index: {}]   ;;  %s1704_s1 = inlined_call_operand.vmem [shape: f32[4,2], index: 1, kind: input, shape index: {}]   ;;  %s1705_s2 = inlined_call_operand.vmem [shape: f32[1,2], index: 2, kind: input, shape index: {}]   ;;  %s1706_s3 = inlined_call_operand.vmem [shape: f32[2,4], index: 3, kind: input, shape index: {}]   ;;  %s1707_s4 = inlined_call_operand.vmem [shape: f32[1,4], index: 4, kind: input, shape index: {}]   ;;  %s1708_s5 = inlined_call_operand.hbm [shape: f32[18,256], index: 5, kind: input, shape index: {}]   ;;  %s1709_s6 = inlined_call_operand.<no memory space> [shape: f32[1], index: 6, kind: input, shape index: {}]   ;;  %s1710_s7 = inlined_call_operand.hbm [shape: f32[2,4,256], index: 7, kind: output, shape index: {}]  }
   0x1   :  { %12 = sst [smem:[#allocation2]] %s1709_s6 }
   0x2   :  { %13 = vsyncpa [#allocation4], 0 }
   0x3   :  { %15 = vsyncpa [#allocation4 + $0x1], 0 }
   0x4   :  { %16 = vsyncpa [#allocation7], 0 }
   0x5   :  { %17 = vsyncpa [#allocation5], 0 }
   0x6   :  { %19 = vsyncpa [#allocation5 + $0x1], 0  ;;  %s1263_s26 = smov 0   ;;  %s1265_s27 = smov 0  }
   0x7   :  { %s1267_s28 = smov 0   ;;  %s1269_s29 = smov 0  }
   0x8 LB: > { %s1284_s6 = sadd.s32 4294967295, %s1202_s29   ;;  %s950_s30 = sadd.s32 4294967294, %s1202_s29   ;;  %s1202_s29 = sphi %s1269_s29, %s1730_s29   ;;  %s1198_s28 = sphi %s1267_s28, %s1729_s28   ;;  %s1194_s27 = sphi %s1265_s27, %s1728_s27   ;;  %s1190_s26 = sphi %s1263_s26, %s1727_s26  }
   0x9   : > { %p45_p0 = scmp.ne.s32.totalorder %s1194_s27, %s1190_s26  ;;  %p1711_p1 = scmp.eq.s32.totalorder %s1284_s6, 0 }
   0xa   : > { %p201_p3 = scmp.eq.s32.totalorder %s950_s30, 1  ;;  %p951_p5 = scmp.ge.s32.totalorder %s1202_s29, 1 }
   0xb   : > { %p1293_p4 = por %p1711_p1, %p45_p0  ;;  %p208_p7 = scmp.lt.s32.totalorder %s1202_s29, 3 }
   0xc   : > { %p1298_p6 = por %p201_p3, %p45_p0  ;;  %s1204_s11 = smov [#allocation6]  }
   0xd   : > { %s1714_s8 = scalar_select %p1293_p4, 1, 0 }
   0xe   : > { %s1715_s9 = scalar_select %p1298_p6, 1, 0 }
   0xf   : > { %p1303_p8 = pnand %p951_p5, %p208_p7  ;;  %s232_s12 = sshll.u32 %s1204_s11, 4  ;;  %s1307_s12 = int_to_ptr.vmem [resolvable:$true] %s232_s12 }
  0x10   : > { %s1319_s14 = sadd.s32 1, %s1202_s29   ;;  %s32_s15 = sadd.s32 1, %s1198_s28 }
  0x11   : > { %s1716_s10 = scalar_select %p1303_p8, 1, 0 }
  0x12   : > { %p999_p9 = pneg %p1303_p8  ;;  %s29_s16 = ssub.s32 %s1202_s29, %s1319_s14 }
  0x13   : > { %s1074_s19 = scalar_lea.hbm %s1708_s5, 768 }
  0x14   : > { %p1314_p11 = pnand %p999_p9, %p1711_p1  ;;  %p1075_p12 = scmp.ne.s32.totalorder %s1708_s5, %s1074_s19 }
  0x15   : > { %p1081_p5 = scmp.lt.u32.totalorder %s1074_s19, %s1708_s5 }
  0x16   : > { %p1076_p13 = pneg %p1314_p11 }
  0x18   : > { %p1077_p0 = pnand %p1076_p13, %p1075_p12 }
  0x1a   : > { %p1078_p3 = pneg %p1077_p0 }
  0x1c   : > { %p1083_p7 = pnand %p1081_p5, %p1078_p3 }
  0x1e   : > { %1086 = shalt.err (!%p1083_p7)
}
  0x1f   : > { %s1087_s24 = scalar_lea.vmem %s1307_s12, 768  ;;  %p1095_p2 = scmp.lt.s32.totalorder %s1307_s12, %s1307_s12 }
  0x20   : > { %p1088_p9 = scmp.ne.s32.totalorder %s1307_s12, %s1087_s24  ;;  %p1096_p6 = scmp.lt.s32.totalorder %s1087_s24, %s1087_s24 }
  0x22   : > { %p1090_p10 = pnand %p1088_p9, %p1076_p13  ;;  %p1097_p4 = por %p1096_p6, %p1095_p2 }
  0x24   : > { %p1091_p1 = pneg %p1090_p10 }
  0x26   : > { %p1098_p8 = pnand %p1097_p4, %p1091_p1 }
  0x28   : > { %1101 = shalt.err (!%p1098_p8)
}
  0x29   : > { %s1205_s25 = smov 256   ;;  %s1206_s30 = smov 16  }
  0x2a   : > { %1002 = dma.hbm_to_vmem [thread:$0]  (!%p1314_p11), %s1708_s5, 768, %s1307_s12, [#allocation7], %s1205_s25, %s1205_s25, %s1206_s30  }
  0x2b   : > { %p30_p2 = scmp.eq.s32.totalorder %s29_s16, 0  ;;  %p39_p1 = scmp.ne.s32.totalorder %s1198_s28, %s1194_s27 }
  0x2c   : > { %p40_p4 = scmp.eq.s32.totalorder %s1202_s29, 0  ;;  %p1012_p6 = scmp.lt.s32.totalorder %s1202_s29, 2 }
  0x2d   : > { %s1350_s18 = scalar_select %p30_p2, %s1198_s28, %s32_s15  }
  0x2e   : > { %p41_p8 = por %p40_p4, %p39_p1  ;;  %p1718_p10 = scmp.eq.s32.totalorder %s1284_s6, 1 }
  0x2f   : > { %s249_s20 = sand.u32 1, %s1198_s28   ;;  %s975_s21 = sshll.u32 %s1202_s29, 7 }
  0x30   : > { %p1354_p12 = por %p1718_p10, %p39_p1  ;;  %s954_s22 = sshll.u32 %s249_s20, 3 }
  0x31   : > { %s1363_s24 = scalar_lea.hbm %s1703_s0, %s975_s21  ;;  %s253_s12 = scalar_lea.vmem [#allocation3], %s954_s22 }
  0x32   : > { %s261_s15 = sshll.u32 %s253_s12, 4  ;;  %p1365_p11 = pnand %p1012_p6, %p41_p8  ;;  %s1369_s15 = int_to_ptr.vmem [resolvable:$true] %s261_s15 }
  0x33   : > { %s250_s25 = scalar_lea.sflag [#allocation4], %s249_s20  ;;  %s1102_s30 = scalar_lea.hbm %s1363_s24, 128 }
  0x34   : > { %p1103_p13 = scmp.ne.s32.totalorder %s1363_s24, %s1102_s30  ;;  %p1104_p0 = pneg %p1365_p11 }
  0x35   : > { %s1107_s21 = scalar_lea.hbm %s1703_s0, 256  ;;  %p1108_p7 = scmp.lt.u32.totalorder %s1363_s24, %s1703_s0 }
  0x36   : > { %p1105_p3 = pnand %p1104_p0, %p1103_p13  ;;  %p1109_p9 = scmp.lt.u32.totalorder %s1107_s21, %s1102_s30 }
  0x37   : > { %p1111_p1 = scmp.lt.u32.totalorder %s1102_s30, %s1363_s24 }
  0x38   : > { %p1106_p5 = pneg %p1105_p3  ;;  %p1110_p2 = por %p1109_p9, %p1108_p7 }
  0x3a   : > { %p1112_p4 = por %p1111_p1, %p1110_p2 }
  0x3c   : > { %p1113_p6 = pnand %p1112_p4, %p1106_p5 }
  0x3e   : > { %1116 = shalt.err (!%p1113_p6)
}
  0x3f   : > { %s1117_s20 = scalar_lea.vmem %s1369_s15, 128  ;;  %s1207_s23 = smov [#allocation3]  }
  0x40   : > { %p1118_p8 = scmp.ne.s32.totalorder %s1369_s15, %s1117_s20  ;;  %s1122_s12 = sshll.u32 %s1207_s23, 4  ;;  %s1123_s12 = int_to_ptr.vmem [resolvable:$false] %s1122_s12 }
  0x41   : > { %s1124_s11 = scalar_lea.vmem %s1123_s12, 256  ;;  %p1125_p3 = scmp.lt.s32.totalorder %s1369_s15, %s1123_s12 }
  0x42   : > { %p1120_p10 = pnand %p1118_p8, %p1104_p0  ;;  %p1126_p7 = scmp.lt.s32.totalorder %s1124_s11, %s1117_s20 }
  0x44   : > { %p1121_p13 = pneg %p1120_p10  ;;  %p1127_p9 = por %p1126_p7, %p1125_p3 }
  0x46   : > { %p1128_p2 = pnand %p1127_p9, %p1121_p13 }
  0x48   : > { %1131 = shalt.err (!%p1128_p2)
}
  0x49   : > { %1006 = dma.hbm_to_vmem [thread:$0]  (!%p1365_p11), %s1363_s24, 128, %s1369_s15, %s250_s25  }
  0x4a   : > { %p1721_p5 = scmp.ne.s32.totalorder %s1716_s10, 0 }
  0x4b   : > { %s1399_s30 = sand.u32 (!%p1721_p5), 1, %s1194_s27   ;;  %p1722_p0 = scmp.ne.s32.totalorder (!%p1721_p5), %s1714_s8, 0 }
  0x4c   : > { %270 = sbr.rel (%p1721_p5) target bundleno = 1077 (0x435), region = 48  ;;  %s958_s17 = sshll.u32 (!%p1721_p5), %s1399_s30, 3 }
  0x4d   : > { %s273_s21 = scalar_lea.sflag (!%p1721_p5), [#allocation4], %s1399_s30  ;;  %s276_s22 = scalar_lea.vmem (!%p1721_p5), [#allocation3], %s958_s17 }
  0x53   : > { %1177 = dma.done.wait (%p1722_p0), %s273_s21, 128  }
  0x54   : > { %1179 = vsyncadd (%p1722_p0), %s273_s21, 4294967168  ;;  %p1723_p11 = scmp.eq.s32.totalorder %s1284_s6, 0 }
  0x56   : > { %1181 = dma.done.wait (%p1723_p11), [#allocation7], 768   ;;  %p1724_p1 = pmov %p1723_p11 }
  0x57   : > { %vm315_vm0 = vcmask 1043456   ;;  %v311_v0 = vld [vmem:[%s276_s22] sm:$0xff]  ;;  %v1208_v9 = vmov 0.0   ;;  %vm1209_vm1 = vmmov 0   ;;  %v328_v10 = vlaneseq  ;;  %s1211_s23 = smov 127   ;;  %s1212_s12 = smov 17  }
  0x58   : > { %1183 = vsyncadd (%p1724_p1), [#allocation7], 4294966528  ;;  %v313_v1 = vcombine.high %v311_v0, %v311_v0  ;;  %v316_v2 = vsel %vm315_vm0, %v311_v0, 0.0  ;;  %v322_v4 = vsel %vm315_vm0, %v311_v0, -inf  ;;  %v343_v8 = vld [vmem:[%s1704_s1] sm:$0xf]  ;;  %981 = vmatprep.subr.mxu0 %v1208_v9  ;;  %983 = vmatprep.mubr.msk.f32.mxu0 %vm1209_vm1, %v1208_v9 }
  0x59   : > { %982 = vmatpush3.msk.msra.mxu0 %vm315_vm0, %v343_v8  ;;  %986 = vmatprep.subr.mxu1 %v1208_v9  ;;  %v1421_v11 = vand.u32 127, %v328_v10  ;;  %v331_v12 = vshrl.u32 %v328_v10, 7  ;;  %vm341_vm2 = vcmask 1040384   ;;  %vm351_vm3 = vcmask 31744   ;;  %v429_v20 = vld [vmem:[%s1706_s3] sm:$0x3] }
  0x5a   : > { %v317_v3 = vsel %vm315_vm0, %v313_v1, 0.0  ;;  %v323_v5 = vsel %vm315_vm0, %v313_v1, -inf  ;;  %988 = vmatprep.mubr.msk.f32.mxu1 %vm1209_vm1, %v1208_v9  ;;  %vm441_vm4 = vcmask 1041408   ;;  %v961_v21 = vld [vmem:[%s1705_s2] ss:$0 sm:$0xff]  ;;  %vm437_vm5 = vcmask 15360  }
  0x5b   : > { %v318_v6 = vadd.f32 %v317_v3, %v316_v2  ;;  %v324_v7 = vmax.f32 %v322_v4, %v323_v5  ;;  %v332_v14 = vsub.s32 %v1421_v11, %v331_v12  ;;  %987 = vmatpush3.msk.msra.mxu1 %vm441_vm4, %v429_v20  ;;  %v964_v26 = vld [vmem:[%s1707_s4] ss:$0 sm:$0xff]  ;;  %v1433_v35 = vsub.s32 0, %v331_v12  ;;  %s1213_s11 = smov 113   ;;  %s1214_s21 = smov 16  }
  0x5c   : > { %v1210_v38 = vmov 839922192   ;;  %s1215_s22 = smov 112   ;;  %s1216_s8 = smov 15   ;;  %vm587_vm6 = vcmp.lt.s32.totalorder %v1421_v11, 17  ;;  %vm598_vm7 = vcmp.lt.s32.totalorder %v1421_v11, 16 }
  0x5d   : > { %319 = vadd.xlane.f32.xlu0 %v318_v6  ;;  %v534_v39 = vunpack.c.l.s4 %v1210_v38  ;;  %s1217_s10 = smov 1   ;;  %s1218_s24 = smov 111   ;;  %vm615_vm8 = vcmp.lt.s32.totalorder %v1421_v11, 15  ;;  %vm630_vm9 = vcmp.lt.s32.totalorder %v1421_v11, 1  ;;  %vm655_vm10 = vcmp.lt.s32.totalorder %v1421_v11, 127 }
  0x5e   : > { %s581_s15 = sld [smem:[#allocation2]]  ;;  %vm670_vm11 = vcmp.lt.s32.totalorder %v1421_v11, 113  ;;  %vm685_vm12 = vcmp.lt.s32.totalorder %v1421_v11, 112  ;;  %vm700_vm13 = vcmp.lt.s32.totalorder %v1421_v11, 111  ;;  %s976_s16 = sshll.u32 %s1284_s6, 7 }
  0x5f   : > { %v535_v40 = vunpack.c.0.s8 %v534_v39  ;;  %s310_s25 = scalar_lea.vmem [#allocation8], %s958_s17  ;;  %s1219_s6 = smov [#allocation8]  }
  0x60   : > { %s870_s13 = sshll.u32 %s310_s25, 4  ;;  %s1136_s17 = sshll.u32 %s1219_s6, 4  ;;  %s1661_s13 = int_to_ptr.vmem [resolvable:$true] %s870_s13  ;;  %s1137_s17 = int_to_ptr.vmem [resolvable:$false] %s1136_s17 }
  0x61   : > { %325 = vmax.xlane.f32.xlu0 %v324_v7  ;;  %v538_v41 = vsub.s32 %v535_v40, %v331_v12  ;;  %p1139_p10 = scmp.lt.s32.totalorder %s1661_s13, %s1137_s17 }
  0xea   : > { %v320_v13 = vpop.xlane.xlu0 %319 }
  0xeb   : > { %v321_v15 = vmul.f32 0.00390625, %v320_v13 }
  0xed   : > { %v333_v17 = vrot.slane %v321_v15, %v332_v14 }
  0xee   : > { %v326_v16 = vpop.xlane.xlu0 %325 }
  0xef   : > { %v339_v18 = vrot.slane %v326_v16, %v332_v14 }
  0xf1   : > { %v342_v19 = vsel %vm341_vm2, %v333_v17, %v339_v18 }
  0xf2   : > { %984 = vmatmul.mubr.msk.f32.vlgmr.msra.gmra.mrb[0].mxu0 %vm351_vm3, %v342_v19 }
 0x1c5   : > { %v424_v22 = vpop.f32.mrb[0].mxu0 }
 0x1c6   : > { %v425_v23 = vadd.f32 %v961_v21, %v424_v22  ;;  %v985_v24 = vpop.f32.mrb[1].mxu0 }
 0x1c8   : > { %v428_v25 = vmax.f32 %v425_v23, 0.0 }
 0x1ca   : > { %989 = vmatmul.mubr.msk.f32.vlgmr.msra.gmra.mrb[0].mxu1 %vm437_vm5, %v428_v25 }
 0x29d   : > { %v511_v27 = vpop.f32.mrb[0].mxu1 }
 0x29e   : > { %v512_v28 = vadd.f32 %v964_v26, %v511_v27  ;;  %v990_v29 = vpop.f32.mrb[1].mxu1  ;;  %v1513_v26 = vld [vmem:[#allocation6] sm:$0xff]  ;;  %v1515_v27 = vld [vmem:[#allocation6 + $0x8] sm:$0xff] }
 0x29f   : > { %v618_v38 = vrot.slane %v1513_v26, 2  ;;  %v619_v39 = vrot.slane %v1515_v27, 2 }
 0x2a0   : > { %v516_v30 = vrot.slane %v512_v28, 1 }
 0x2a2   : > { %v518_v31 = vadd.f32 %v516_v30, %v512_v28 }
 0x2a4   : > { %v967_v32 = vmul.f32 -1.442695, %v518_v31  ;;  %v603_v31 = vrot.slane %v1513_v26, 1 }
 0x2a6   : > { %1062 = vpow2.f32 %v967_v32  ;;  %v604_v32 = vrot.slane %v1515_v27, 1 }
 0x2b0   : > { %v1063_v33 = vpop.eup %1062 }
 0x2b1   : > { %v522_v34 = vadd.f32 1.0, %v1063_v33 }
 0x2b3   : > { %1064 = vrcp.f32 %v522_v34 }
 0x2bd   : > { %v1065_v36 = vpop.eup %1064 }
 0x2be   : > { %v528_v37 = vrot.slane %v1065_v36, %v1433_v35 }
 0x2c0   : > { %530 = vbcast.lane.b32.xlu1 %v528_v37, 256 }
 0x332   : > { %v531_v42 = vpop.permute.xlu1 %530 }
 0x333   : > { %v539_v43 = vrot.slane %v531_v42, %v538_v41  ;;  %v582_v41 = vstv %s581_s15 }
 0x335   : > { %v1436_v44 = vmul.f32 %v539_v43, %v311_v0 }
 0x337   : > { %v543_v45 = vcombine.high %v1436_v44, %v1436_v44  ;;  %v545_v46 = vsel %vm315_vm0, %v1436_v44, 0.0  ;;  %v561_v58 = vsel %vm315_vm0, %v1436_v44, -inf }
 0x338   : > { %v546_v47 = vrot.slane %v545_v46, 4  ;;  %v562_v62 = vrot.slane %v561_v58, 4 }
 0x339   : > { %v552_v48 = vsel %vm315_vm0, %v543_v45, 0.0  ;;  %v568_v53 = vsel %vm315_vm0, %v543_v45, -inf }
 0x33a   : > { %v547_v49 = vadd.f32 %v546_v47, %v545_v46  ;;  %v553_v50 = vrot.slane %v552_v48, 4  ;;  %v569_v57 = vrot.slane %v568_v53, 4  ;;  %v563_v1 = vmax.f32 %v561_v58, %v562_v62 }
 0x33b   : > { %v633_v47 = vrot.slane %v1513_v26, 3 }
 0x33c   : > { %v548_v51 = vrot.slane %v547_v49, 2  ;;  %v554_v52 = vadd.f32 %v553_v50, %v552_v48  ;;  %v570_v63 = vmax.f32 %v568_v53, %v569_v57  ;;  %v564_v4 = vrot.slane %v563_v1, 2 }
 0x33d   : > { %v634_v48 = vrot.slane %v1515_v27, 3 }
 0x33e   : > { %v549_v54 = vadd.f32 %v548_v51, %v547_v49  ;;  %v555_v56 = vrot.slane %v554_v52, 2  ;;  %v571_v2 = vrot.slane %v570_v63, 2  ;;  %v565_v7 = vmax.f32 %v563_v1, %v564_v4 }
 0x340   : > { %v550_v55 = vrot.slane %v549_v54, 1  ;;  %v556_v60 = vadd.f32 %v555_v56, %v554_v52  ;;  %v572_v5 = vmax.f32 %v570_v63, %v571_v2  ;;  %v566_v9 = vrot.slane %v565_v7, 1 }
 0x342   : > { %v551_v59 = vadd.f32 %v550_v55, %v549_v54  ;;  %v557_v0 = vrot.slane %v556_v60, 1  ;;  %v573_v8 = vrot.slane %v572_v5, 1  ;;  %v1465_v12 = vmax.f32 %v565_v7, %v566_v9 }
 0x344   : > { %v1446_v61 = vmul.f32 0.25, %v551_v59  ;;  %v558_v3 = vadd.f32 %v557_v0, %v556_v60  ;;  %v1461_v10 = vmax.f32 %v572_v5, %v573_v8  ;;  %v659_v8 = vrot.slane %v1515_v27, 5 }
 0x346   : > { %651 = vrot.lane.b32.xlu0 %v1446_v61, %s1211_s23  ;;  %583 = vrot.lane.b32.xlu1 %v1446_v61, %s1212_s12  ;;  %v1457_v6 = vmul.f32 0.25, %v558_v3  ;;  %v641_v62 = vmul.f32 %v1513_v26, %v1446_v61  ;;  %v658_v3 = vrot.slane %v1513_v26, 5 }
 0x348   : > { %v642_v2 = vmul.f32 %v1515_v27, %v1457_v6  ;;  %v645_v9 = vrot.slane %v641_v62, 4 }
 0x34a   : > { %666 = vrot.lane.b32.xlu0 %v1446_v61, %s1213_s11  ;;  %594 = vrot.lane.b32.xlu1 %v1446_v61, %s1214_s21 }
 0x34e   : > { %681 = vrot.lane.b32.xlu0 %v1446_v61, %s1215_s22  ;;  %611 = vrot.lane.b32.xlu1 %v1446_v61, %s1216_s8 }
 0x352   : > { %626 = vrot.lane.b32.xlu1 %v1446_v61, %s1217_s10  ;;  %585 = vrot.lane.b32.xlu0 %v1457_v6, %s1212_s12 }
 0x356   : > { %709 = vrot.lane.b32.xlu1 %v1461_v10, %s1212_s12  ;;  %696 = vrot.lane.b32.xlu0 %v1446_v61, %s1218_s24 }
 0x35a   : > { %725 = vrot.lane.b32.xlu1 %v1461_v10, %s1214_s21  ;;  %707 = vrot.lane.b32.xlu0 %v1465_v12, %s1212_s12  ;;  %s1659_s12 = scalar_lea.hbm %s1710_s7, %s976_s16 }
 0x35e   : > { %739 = vrot.lane.b32.xlu1 %v1461_v10, %s1216_s8  ;;  %723 = vrot.lane.b32.xlu0 %v1465_v12, %s1214_s21 }
 0x362   : > { %596 = vrot.lane.b32.xlu1 %v1457_v6, %s1214_s21  ;;  %737 = vrot.lane.b32.xlu0 %v1465_v12, %s1216_s8  ;;  %s1132_s21 = scalar_lea.vmem %s1661_s13, 128 }
 0x363   : > { %p1133_p4 = scmp.ne.s32.totalorder %s1661_s13, %s1132_s21 }
 0x365   : > { %p1134_p6 = pnand %p1133_p4, %p1354_p12 }
 0x366   : > { %613 = vrot.lane.b32.xlu1 %v1457_v6, %s1216_s8  ;;  %751 = vrot.lane.b32.xlu0 %v1465_v12, %s1217_s10 }
 0x367   : > { %p1135_p8 = pneg %p1134_p6 }
 0x36a   : > { %628 = vrot.lane.b32.xlu1 %v1457_v6, %s1217_s10  ;;  %775 = vrot.lane.b32.xlu0 %v1465_v12, %s1211_s23 }
 0x36e   : > { %653 = vrot.lane.b32.xlu1 %v1457_v6, %s1211_s23  ;;  %789 = vrot.lane.b32.xlu0 %v1465_v12, %s1213_s11 }
 0x372   : > { %668 = vrot.lane.b32.xlu1 %v1457_v6, %s1213_s11  ;;  %803 = vrot.lane.b32.xlu0 %v1465_v12, %s1215_s22 }
 0x376   : > { %683 = vrot.lane.b32.xlu1 %v1457_v6, %s1215_s22  ;;  %813 = vrot.lane.b32.xlu0 %v1465_v12, %s1218_s24 }
 0x37a   : > { %698 = vrot.lane.b32.xlu1 %v1457_v6, %s1218_s24  ;;  %v673_v6 = vrot.slane %v1513_v26, 6 }
 0x37e   : > { %753 = vrot.lane.b32.xlu1 %v1461_v10, %s1217_s10 }
 0x382   : > { %777 = vrot.lane.b32.xlu1 %v1461_v10, %s1211_s23 }
 0x386   : > { %791 = vrot.lane.b32.xlu1 %v1461_v10, %s1213_s11  ;;  %s856_s11 = scalar_lea.sflag [#allocation5], %s1399_s30 }
 0x38a   : > { %805 = vrot.lane.b32.xlu1 %v1461_v10, %s1215_s22  ;;  %s1138_s22 = scalar_lea.vmem %s1137_s17, 256 }
 0x38b   : > { %p1140_p13 = scmp.lt.s32.totalorder %s1138_s22, %s1132_s21 }
 0x38d   : > { %p1141_p3 = por %p1140_p13, %p1139_p10 }
 0x38e   : > { %815 = vrot.lane.b32.xlu1 %v1461_v10, %s1218_s24 }
 0x38f   : > { %p1142_p7 = pnand %p1141_p3, %p1135_p8 }
 0x3b8   : > { %v1498_v13 = vpop.permute.xlu0 %651  ;;  %v584_v14 = vpop.permute.xlu1 %583 }
 0x3bc   : > { %v595_v15 = vpop.permute.xlu1 %594  ;;  %v1500_v16 = vpop.permute.xlu0 %666 }
 0x3c0   : > { %v612_v17 = vpop.permute.xlu1 %611  ;;  %v1502_v18 = vpop.permute.xlu0 %681 }
 0x3c4   : > { %v627_v19 = vpop.permute.xlu1 %626  ;;  %v586_v21 = vpop.permute.xlu0 %585 }
 0x3c5   : > { %v588_v28 = vsel %vm587_vm6, %v584_v14, %v586_v21  ;;  %v589_v29 = vsel %vm587_vm6, %v586_v21, %v584_v14 }
 0x3c6   : > { %v590_v36 = vmul.f32 %v589_v29, %v1513_v26  ;;  %v591_v37 = vmul.f32 %v588_v28, %v1515_v27  ;;  %v688_v28 = vrot.slane %v1513_v26, 7  ;;  %v1580_v26 = vld [vmem:[#allocation6 + $0x10] sm:$0xff] }
 0x3c7   : > { %v743_v62 = vrot.slane %v1580_v26, 3 }
 0x3c8   : > { %v1504_v20 = vpop.permute.xlu1 %709  ;;  %v1508_v23 = vpop.permute.xlu0 %696  ;;  %v592_v49 = vadd.f32 %v590_v36, %v582_v41  ;;  %v593_v50 = vadd.f32 %v591_v37, %v582_v41 }
 0x3cc   : > { %v1506_v22 = vpop.permute.xlu1 %725  ;;  %v1521_v30 = vpop.permute.xlu0 %707 }
 0x3d0   : > { %v1510_v24 = vpop.permute.xlu1 %739  ;;  %v1542_v51 = vpop.permute.xlu0 %723 }
 0x3d4   : > { %v597_v25 = vpop.permute.xlu1 %596  ;;  %v738_v4 = vpop.permute.xlu0 %737 }
 0x3d5   : > { %v599_v33 = vsel %vm598_vm7, %v595_v15, %v597_v25  ;;  %v600_v34 = vsel %vm598_vm7, %v597_v25, %v595_v15  ;;  %v646_v15 = vrot.slane %v642_v2, 4 }
 0x3d6   : > { %v607_v45 = vmul.f32 %v603_v31, %v600_v34  ;;  %v608_v46 = vmul.f32 %v604_v32, %v599_v33 }
 0x3d8   : > { %v614_v40 = vpop.permute.xlu1 %613  ;;  %v609_v57 = vadd.f32 %v607_v45, %v592_v49  ;;  %v610_v58 = vadd.f32 %v608_v46, %v593_v50  ;;  %v752_v34 = vpop.permute.xlu0 %751  ;;  %v715_v45 = vrot.slane %v1580_v26, 1 }
 0x3d9   : > { %v616_v42 = vsel %vm615_vm8, %v612_v17, %v614_v40  ;;  %v617_v43 = vsel %vm615_vm8, %v614_v40, %v612_v17  ;;  %v674_v17 = vrot.slane %v1515_v27, 6 }
 0x3da   : > { %v622_v52 = vmul.f32 %v618_v38, %v617_v43  ;;  %v623_v53 = vmul.f32 %v619_v39, %v616_v42 }
 0x3dc   : > { %v629_v54 = vpop.permute.xlu1 %628  ;;  %v624_v63 = vadd.f32 %v622_v52, %v609_v57  ;;  %v625_v0 = vadd.f32 %v623_v53, %v610_v58  ;;  %v711_v52 = vsel %vm587_vm6, %v1521_v30, %v1504_v20  ;;  %v712_v53 = vsel %vm587_vm6, %v1504_v20, %v1521_v30 }
 0x3dd   : > { %v631_v55 = vsel %vm630_vm9, %v627_v19, %v629_v54  ;;  %v632_v56 = vsel %vm630_vm9, %v629_v54, %v627_v19  ;;  %v727_v20 = vsel %vm598_vm7, %v1542_v51, %v1506_v22  ;;  %v728_v30 = vsel %vm598_vm7, %v1506_v22, %v1542_v51 }
 0x3de   : > { %v637_v59 = vmul.f32 %v633_v47, %v632_v56  ;;  %v638_v60 = vmul.f32 %v634_v48, %v631_v55  ;;  %v729_v47 = vrot.slane %v1580_v26, 2  ;;  %v776_v56 = vpop.permute.xlu0 %775 }
 0x3e0   : > { %v654_v1 = vpop.permute.xlu1 %653  ;;  %v639_v5 = vadd.f32 %v637_v59, %v624_v63  ;;  %v640_v7 = vadd.f32 %v638_v60, %v625_v0  ;;  %v719_v63 = vmul.f32 %v715_v45, %v712_v53  ;;  %v733_v51 = vmul.f32 %v729_v47, %v728_v30 }
 0x3e1   : > { %v656_v61 = vsel %vm655_vm10, %v1498_v13, %v654_v1  ;;  %v657_v14 = vsel %vm655_vm10, %v654_v1, %v1498_v13  ;;  %v689_v13 = vrot.slane %v1515_v27, 7  ;;  %v1582_v27 = vld [vmem:[#allocation6 + $0x18] sm:$0xff] }
 0x3e2   : > { %v649_v29 = vadd.f32 %v645_v9, %v639_v5  ;;  %v650_v31 = vadd.f32 %v646_v15, %v640_v7  ;;  %v662_v32 = vmul.f32 %v658_v3, %v656_v61  ;;  %v663_v33 = vmul.f32 %v659_v8, %v657_v14 }
 0x3e3   : > { %v716_v46 = vrot.slane %v1582_v27, 1  ;;  %v730_v48 = vrot.slane %v1582_v27, 2  ;;  %v741_v5 = vsel %vm615_vm8, %v738_v4, %v1510_v24  ;;  %v742_v7 = vsel %vm615_vm8, %v1510_v24, %v738_v4 }
 0x3e4   : > { %v669_v19 = vpop.permute.xlu1 %668  ;;  %v664_v40 = vadd.f32 %v662_v32, %v649_v29  ;;  %v665_v41 = vadd.f32 %v663_v33, %v650_v31  ;;  %v757_v8 = vrot.slane %v1580_v26, 4  ;;  %v758_v22 = vrot.slane %v1582_v27, 4 }
 0x3e5   : > { %v671_v21 = vsel %vm670_vm11, %v1500_v16, %v669_v19  ;;  %v672_v25 = vsel %vm670_vm11, %v669_v19, %v1500_v16  ;;  %v720_v0 = vmul.f32 %v716_v46, %v711_v52  ;;  %v734_v9 = vmul.f32 %v730_v48, %v727_v20  ;;  %v580_v52 = vld [vmem:[#allocation6 + $0x28] sm:$0x3] }
 0x3e6   : > { %v677_v36 = vmul.f32 %v673_v6, %v671_v21  ;;  %v678_v37 = vmul.f32 %v674_v17, %v672_v25  ;;  %v765_v17 = vmul.f32 %v1580_v26, %v1465_v12  ;;  %v766_v24 = vmul.f32 %v1582_v27, %v1461_v10  ;;  %v790_v21 = vpop.permute.xlu0 %789 }
 0x3e7   : > { %v747_v4 = vmul.f32 %v743_v62, %v742_v7  ;;  %v781_v29 = vrot.slane %v1580_v26, 6  ;;  %v782_v31 = vrot.slane %v1582_v27, 6 }
 0x3e8   : > { %v684_v38 = vpop.permute.xlu1 %683  ;;  %v679_v49 = vadd.f32 %v677_v36, %v664_v40  ;;  %v795_v40 = vrot.slane %v1580_v26, 7 }
 0x3e9   : > { %v686_v39 = vsel %vm685_vm12, %v1502_v18, %v684_v38  ;;  %v687_v16 = vsel %vm685_vm12, %v684_v38, %v1502_v18  ;;  %v680_v18 = vadd.f32 %v678_v37, %v665_v41  ;;  %v769_v37 = vrot.slane %v765_v17, 5 }
 0x3ea   : > { %v692_v42 = vmul.f32 %v688_v28, %v686_v39  ;;  %v693_v43 = vmul.f32 %v689_v13, %v687_v16  ;;  %v770_v38 = vrot.slane %v766_v24, 5  ;;  %v796_v41 = vrot.slane %v1582_v27, 7  ;;  %v804_v46 = vpop.permute.xlu0 %803 }
 0x3ec   : > { %v699_v50 = vpop.permute.xlu1 %698  ;;  %v694_v57 = vadd.f32 %v692_v42, %v679_v49  ;;  %v695_v58 = vadd.f32 %v693_v43, %v680_v18 }
 0x3ed   : > { %v701_v54 = vsel %vm700_vm13, %v1508_v23, %v699_v50  ;;  %v702_v55 = vsel %vm700_vm13, %v699_v50, %v1508_v23  ;;  %v744_v23 = vrot.slane %v1582_v27, 3  ;;  %v579_v50 = vld [vmem:[#allocation6 + $0x20] sm:$0x3] }
 0x3ee   : > { %v703_v59 = vmul.f32 %v701_v54, %v1580_v26  ;;  %v704_v60 = vmul.f32 %v702_v55, %v1582_v27 }
 0x3ef   : > { %v748_v19 = vmul.f32 %v744_v23, %v741_v5  ;;  %v814_v23 = vpop.permute.xlu0 %813 }
 0x3f0   : > { %v705_v1 = vadd.f32 %v703_v59, %v694_v57  ;;  %v706_v2 = vadd.f32 %v704_v60, %v695_v58  ;;  %v754_v3 = vpop.permute.xlu1 %753  ;;  %v821_v58 = vrot.slane %v579_v50, 1  ;;  %v822_v59 = vrot.slane %v580_v52, 1 }
 0x3f1   : > { %v755_v15 = vsel %vm630_vm9, %v752_v34, %v754_v3  ;;  %v756_v6 = vsel %vm630_vm9, %v754_v3, %v752_v34 }
 0x3f2   : > { %v721_v61 = vadd.f32 %v719_v63, %v705_v1  ;;  %v722_v14 = vadd.f32 %v720_v0, %v706_v2  ;;  %v761_v36 = vmul.f32 %v757_v8, %v756_v6  ;;  %v762_v34 = vmul.f32 %v758_v22, %v755_v15 }
 0x3f4   : > { %v735_v25 = vadd.f32 %v733_v51, %v721_v61  ;;  %v736_v28 = vadd.f32 %v734_v9, %v722_v14  ;;  %v778_v13 = vpop.permute.xlu1 %777 }
 0x3f5   : > { %v779_v12 = vsel %vm655_vm10, %v776_v56, %v778_v13  ;;  %v780_v10 = vsel %vm655_vm10, %v778_v13, %v776_v56 }
 0x3f6   : > { %v749_v32 = vadd.f32 %v747_v4, %v735_v25  ;;  %v750_v33 = vadd.f32 %v748_v19, %v736_v28  ;;  %v785_v49 = vmul.f32 %v781_v29, %v779_v12  ;;  %v786_v18 = vmul.f32 %v782_v31, %v780_v10 }
 0x3f8   : > { %v763_v39 = vadd.f32 %v761_v36, %v749_v32  ;;  %v764_v16 = vadd.f32 %v762_v34, %v750_v33  ;;  %v792_v42 = vpop.permute.xlu1 %791 }
 0x3f9   : > { %v793_v43 = vsel %vm670_vm11, %v790_v21, %v792_v42  ;;  %v794_v45 = vsel %vm670_vm11, %v792_v42, %v790_v21 }
 0x3fa   : > { %v773_v47 = vadd.f32 %v769_v37, %v763_v39  ;;  %v774_v48 = vadd.f32 %v770_v38, %v764_v16  ;;  %v799_v55 = vmul.f32 %v795_v40, %v793_v43  ;;  %v800_v26 = vmul.f32 %v796_v41, %v794_v45 }
 0x3fc   : > { %v787_v53 = vadd.f32 %v785_v49, %v773_v47  ;;  %v788_v54 = vadd.f32 %v786_v18, %v774_v48  ;;  %v806_v56 = vpop.permute.xlu1 %805 }
 0x3fd   : > { %v807_v27 = vsel %vm685_vm12, %v804_v46, %v806_v56  ;;  %v808_v57 = vsel %vm685_vm12, %v806_v56, %v804_v46 }
 0x3fe   : > { %v801_v60 = vadd.f32 %v799_v55, %v787_v53  ;;  %v802_v20 = vadd.f32 %v800_v26, %v788_v54  ;;  %v809_v30 = vmul.f32 %v807_v27, %v579_v50  ;;  %v810_v62 = vmul.f32 %v808_v57, %v580_v52 }
 0x400   : > { %v816_v63 = vpop.permute.xlu1 %815  ;;  %v811_v2 = vadd.f32 %v809_v30, %v801_v60  ;;  %v812_v3 = vadd.f32 %v810_v62, %v802_v20 }
 0x401   : > { %v817_v0 = vsel %vm700_vm13, %v814_v23, %v816_v63  ;;  %v818_v1 = vsel %vm700_vm13, %v816_v63, %v814_v23 }
 0x402   : > { %v825_v5 = vmul.f32 %v821_v58, %v817_v0  ;;  %v826_v7 = vmul.f32 %v822_v59, %v818_v1 }
 0x404   : > { %v827_v8 = vadd.f32 %v825_v5, %v811_v2  ;;  %v828_v22 = vadd.f32 %v826_v7, %v812_v3 }
 0x406   : > { %v968_v51 = vmul.f32 -1.442695, %v827_v8  ;;  %v969_v9 = vmul.f32 -1.442695, %v828_v22 }
 0x408   : > { %1066 = vpow2.f32 %v968_v51 }
 0x409   : > { %1068 = vpow2.f32 %v969_v9 }
 0x412   : > { %v1067_v61 = vpop.eup %1066 }
 0x413   : > { %v1069_v14 = vpop.eup %1068  ;;  %v835_v15 = vadd.f32 1.0, %v1067_v61 }
 0x414   : > { %v836_v6 = vadd.f32 1.0, %v1069_v14 }
 0x415   : > { %1070 = vrcp.f32 %v835_v15 }
 0x416   : > { %1072 = vrcp.f32 %v836_v6 }
 0x41f   : > { %v1071_v11 = vpop.eup %1070 }
 0x420   : > { %v1073_v17 = vpop.eup %1072  ;;  %v844_v24 = vrot.slane %v1071_v11, %v1433_v35 }
 0x421   : > { %v848_v4 = vrot.slane %v1073_v17, %v1433_v35 }
 0x423   : > { %v851_v19 = vcombine.low %v844_v24, %v848_v4 }
 0x425   : > { %v853_v21 = vmul.f32 %v851_v19, %v1436_v44 }
 0x427   : > { %854 = vst [vmem:[%s310_s25] sm:$0xff] %v853_v21 }
 0x428   : > { %1145 = shalt.err (!%p1142_p7)
}
 0x429   : > { %s1146_s30 = scalar_lea.hbm %s1659_s12, 128  ;;  %s1150_s24 = scalar_lea.hbm %s1710_s7, 256 }
 0x42a   : > { %p1147_p9 = scmp.ne.s32.totalorder %s1659_s12, %s1146_s30  ;;  %p1151_p0 = scmp.lt.u32.totalorder %s1659_s12, %s1710_s7 }
 0x42b   : > { %p1152_p11 = scmp.lt.u32.totalorder %s1150_s24, %s1146_s30  ;;  %p1154_p4 = scmp.lt.u32.totalorder %s1146_s30, %s1659_s12 }
 0x42c   : > { %p1148_p2 = pnand %p1147_p9, %p1354_p12 }
 0x42d   : > { %p1153_p1 = por %p1152_p11, %p1151_p0 }
 0x42e   : > { %p1149_p5 = pneg %p1148_p2 }
 0x42f   : > { %p1155_p6 = por %p1154_p4, %p1153_p1 }
 0x431   : > { %p1156_p8 = pnand %p1155_p6, %p1149_p5 }
 0x433   : > { %1159 = shalt.err (!%p1156_p8)
}
 0x434   : > { %997 = dma.vmem_to_hbm [thread:$0]  (%p1354_p12), %s1661_s13, 128, %s1659_s12, %s856_s11  }
 0x435 PF: > { %s882_s25 = sand.u32 1, %s1190_s26   ;;  %p1725_p10 = scmp.ne.s32.totalorder %s1715_s9, 0 }
 0x436   : > { %p1726_p13 = scmp.ge.s32.totalorder %s1202_s29, 2  ;;  %s883_s20 = scalar_lea.sflag [#allocation5], %s882_s25 }
 0x438   : > { %p1008_p3 = pnand %p1726_p13, %p1725_p10 }
 0x43a   : > { %1185 = dma.done.wait (!%p1008_p3), %s883_s20, 128  }
 0x43b   : > { %1187 = vsyncadd (!%p1008_p3), %s883_s20, 4294967168  ;;  %p22_p7 = scmp.ge.s32.totalorder %s1319_s14, 4   ;;  %s1727_s26 = smov %s1194_s27 }
 0x43c   : > { %s1728_s27 = smov %s1198_s28  ;;  %s1729_s28 = smov %s1350_s18 }
 0x43d   : > { %s1730_s29 = smov %s1319_s14  ;;  %24 = sbr.rel (!%p22_p7) target bundleno = 8 (0x8), region = 97 }
 0x444   :  { %888 = vsyncpa [#allocation4], 1 }
 0x445   :  { %890 = vsyncpa [#allocation4 + $0x1], 1 }
 0x446   :  { %891 = vsyncpa [#allocation7], 1 }
 0x447   :  { %892 = vsyncpa [#allocation5], 1 }
 0x448   :  { %894 = vsyncpa [#allocation5 + $0x1], 1 }

</bundles_post_ra>
